<compile_context>
chip_gen: v5e
topology: v5e:2x2
jax: 0.10.0
libtpu: 0.0.40
codegen_flags: <defaults>
</compile_context>

<pallas_src>
import functools

import jax
import jax.numpy as jnp
from jax.experimental import pallas as pl
from jax.experimental.pallas import tpu as pltpu


def _round_up(x, m):
    return (x + m - 1) // m * m


def _patches_kernel(x_ref, o_ref, *, rows, Wp, ph, pw):
    # x_ref: (1, C, rows*ph, W)   -- `rows` horizontal patch-row bands of one image
    # o_ref: (rows, Wp, C, ph, pw) -- the rows*Wp patch feature tiles of that group
    # Pure full-slice copies with static offsets only; each patch's live range is a
    # single load->store pair (no whole-band materialisation).
    for r in range(rows):
        for j in range(Wp):
            o_ref[r, j] = x_ref[0, :, r * ph:(r + 1) * ph, j * pw:(j + 1) * pw]


def _pick_rows_per_step(B, Hp, Wp, C, W, ph, itemsize):
    """Largest number of patch rows per grid step that stays cheap and legal."""
    max_patches_per_step = 512          # bound the static unroll inside the kernel
    vmem_budget = 12 << 20              # per-step in+out block bytes (lane-padded);
                                        # x2 double-buffering stays under the 32 MiB
                                        # default scoped VMEM even on v7x (64 MiB phys)

    def step_bytes(rows):
        in_bytes = C * rows * ph * _round_up(W, 128) * itemsize
        out_bytes = rows * Wp * C * _round_up(ph, 8) * 128 * itemsize  # lane-padded
        return in_bytes + out_bytes

    # rows must divide Hp; a partial-height input block additionally needs
    # rows*ph % 8 == 0 (f32 sublane tile). Full-height blocks (rows == Hp) are
    # always legal, which is what makes patch sizes like 14 work.
    candidates = [r for r in range(Hp, 0, -1)
                  if Hp % r == 0 and (r == Hp or (r * ph) % 8 == 0)]
    rows = candidates[-1]
    for r in candidates:
        if r * Wp <= max_patches_per_step and step_bytes(r) <= vmem_budget:
            rows = r
            break
    # v7x has 2 TensorCores sharing HBM: keep the parallel grid extent >= 2 when we
    # can split an image without breaking tiling, so both cores get work.
    if B * (Hp // rows) == 1 and Hp % 2 == 0 and ((Hp // 2) * ph) % 8 == 0:
        rows = Hp // 2
    return rows


def extract_patches(images, patch_size):
    """Pallas-TPU equivalent of images.unfold(2,p,p).unfold(3,p,p).permute.reshape."""
    B, C, H, W = images.shape
    ph = pw = patch_size
    assert H % ph == 0 and W % pw == 0
    Hp, Wp = H // ph, W // pw
    N = Hp * Wp
    feat = C * ph * pw
    itemsize = jnp.dtype(images.dtype).itemsize
    # TODO(synk): for bf16/int8 inputs the (ph, pw) output tile sits below the packed
    # sublane tile (16/32) and pads further; pack two patch rows per tile (or bitcast
    # 2x bf16 -> u32) if packed-dtype throughput ever matters for this copy.

    rows = _pick_rows_per_step(B, Hp, Wp, C, W, ph, itemsize)
    G = Hp // rows   # row-groups per image

    kernel = functools.partial(_patches_kernel, rows=rows, Wp=Wp, ph=ph, pw=pw)

    # Output is produced directly in (b, i, j, c, r, q) element order, so the final
    # reshape to (B, N, feat) is metadata-only (no extra HBM pass).
    # TODO(synk): a lane-dense (B, N, feat) output block (feat % 128 == 0) would turn
    # the stores into unmasked full-lane vst, but needs an in-kernel
    # (C, ph, pw) -> (feat,) sublane->lane relayout that Mosaic does not reliably
    # lower today; kept the relayout-free full-extent (ph, pw) layout instead.
    out = pl.pallas_call(
        kernel,
        out_shape=jax.ShapeDtypeStruct((B * Hp, Wp, C, ph, pw), images.dtype),
        grid=(B, G),
        in_specs=[pl.BlockSpec((1, C, rows * ph, W), lambda b, g: (b, 0, g, 0))],
        out_specs=pl.BlockSpec((rows, Wp, C, ph, pw),
                               lambda b, g: (b * G + g, 0, 0, 0, 0)),
        compiler_params=pltpu.CompilerParams(
            dimension_semantics=("parallel", "parallel")),
        cost_estimate=pl.CostEstimate(
            flops=0, transcendentals=0,
            bytes_accessed=2 * B * C * H * W * itemsize),
    )(images)
    # Contiguous (free) reshape: rows are already in (C, ph, pw) order.
    return out.reshape(B, N, feat)


def _patches_ref(images, patch_size):
    # Plain-JAX reference equal to the torch unfold/permute/reshape path.
    B, C, H, W = images.shape
    p = patch_size
    x = images.reshape(B, C, H // p, p, W // p, p)
    x = x.transpose(0, 2, 4, 1, 3, 5)
    return x.reshape(B, (H // p) * (W // p), C * p * p)


if __name__ == "__main__":
    B, C, H, W = 2, 4, 16, 16
    patch_size = 8

    key = jax.random.PRNGKey(0)
    images = jax.random.normal(key, (B, C, H, W), jnp.float32)

    patches = extract_patches(images, patch_size)
    jax.block_until_ready(patches)

    Hp, Wp = H // patch_size, W // patch_size
    assert patches.shape == (B, Hp * Wp, C * patch_size * patch_size), patches.shape
    ref = _patches_ref(images, patch_size)
    assert bool(jnp.array_equal(patches, ref)), "mismatch vs unfold/permute/reshape reference"
    print("KERNEL_OK")
</pallas_src>

<mosaic_0001>
module attributes {stable_mosaic.version = 11 : i64} {
  func.func @_patches_kernel(%arg0: i32, %arg1: i32, %arg2: memref<1x4x16x16xf32, #tpu.memory_space<vmem>>, %arg3: memref<2x2x4x8x8xf32, #tpu.memory_space<vmem>>) attributes {dimension_semantics = [#tpu.dimension_semantics<parallel>, #tpu.dimension_semantics<parallel>], iteration_bounds = array<i64: 2, 1>, scalar_prefetch = 0 : i64, scratch_operands = 0 : i64, tpu.core_type = #tpu.core_type<tc>, window_params = [{transform_indices = @transform_0, window_bounds = array<i64: 1, 4, 16, 16>}, {transform_indices = @transform_1, window_bounds = array<i64: 2, 2, 4, 8, 8>}]} {
    %c0 = arith.constant 0 : index
    %c0_0 = arith.constant 0 : index
    %c0_1 = arith.constant 0 : index
    %c0_2 = arith.constant 0 : index
    %0 = vector.load %arg2[%c0, %c0_0, %c0_1, %c0_2] : memref<1x4x16x16xf32, #tpu.memory_space<vmem>>, vector<1x4x8x8xf32>
    %1 = vector.shape_cast %0 : vector<1x4x8x8xf32> to vector<4x8x8xf32>
    %c0_3 = arith.constant 0 : index
    %c0_4 = arith.constant 0 : index
    %c0_5 = arith.constant 0 : index
    %c0_6 = arith.constant 0 : index
    %c0_7 = arith.constant 0 : index
    %2 = vector.load %arg3[%c0_3, %c0_4, %c0_5, %c0_6, %c0_7] : memref<2x2x4x8x8xf32, #tpu.memory_space<vmem>>, vector<1x1x4x8x8xf32>
    %3 = vector.shape_cast %2 : vector<1x1x4x8x8xf32> to vector<4x8x8xf32>
    %4 = vector.shape_cast %1 : vector<4x8x8xf32> to vector<1x1x4x8x8xf32>
    tpu.vector_store %arg3[%c0_3, %c0_4, %c0_5, %c0_6, %c0_7], %4 {strides = array<i32>} : memref<2x2x4x8x8xf32, #tpu.memory_space<vmem>>, vector<1x1x4x8x8xf32>,
    %c0_8 = arith.constant 0 : index
    %c0_9 = arith.constant 0 : index
    %c0_10 = arith.constant 0 : index
    %c8 = arith.constant 8 : index
    %5 = vector.load %arg2[%c0_8, %c0_9, %c0_10, %c8] : memref<1x4x16x16xf32, #tpu.memory_space<vmem>>, vector<1x4x8x8xf32>
    %6 = vector.shape_cast %5 : vector<1x4x8x8xf32> to vector<4x8x8xf32>
    %c0_11 = arith.constant 0 : index
    %c1 = arith.constant 1 : index
    %c0_12 = arith.constant 0 : index
    %c0_13 = arith.constant 0 : index
    %c0_14 = arith.constant 0 : index
    %7 = vector.load %arg3[%c0_11, %c1, %c0_12, %c0_13, %c0_14] : memref<2x2x4x8x8xf32, #tpu.memory_space<vmem>>, vector<1x1x4x8x8xf32>
    %8 = vector.shape_cast %7 : vector<1x1x4x8x8xf32> to vector<4x8x8xf32>
    %9 = vector.shape_cast %6 : vector<4x8x8xf32> to vector<1x1x4x8x8xf32>
    tpu.vector_store %arg3[%c0_11, %c1, %c0_12, %c0_13, %c0_14], %9 {strides = array<i32>} : memref<2x2x4x8x8xf32, #tpu.memory_space<vmem>>, vector<1x1x4x8x8xf32>,
    %c0_15 = arith.constant 0 : index
    %c0_16 = arith.constant 0 : index
    %c8_17 = arith.constant 8 : index
    %c0_18 = arith.constant 0 : index
    %10 = vector.load %arg2[%c0_15, %c0_16, %c8_17, %c0_18] : memref<1x4x16x16xf32, #tpu.memory_space<vmem>>, vector<1x4x8x8xf32>
    %11 = vector.shape_cast %10 : vector<1x4x8x8xf32> to vector<4x8x8xf32>
    %c1_19 = arith.constant 1 : index
    %c0_20 = arith.constant 0 : index
    %c0_21 = arith.constant 0 : index
    %c0_22 = arith.constant 0 : index
    %c0_23 = arith.constant 0 : index
    %12 = vector.load %arg3[%c1_19, %c0_20, %c0_21, %c0_22, %c0_23] : memref<2x2x4x8x8xf32, #tpu.memory_space<vmem>>, vector<1x1x4x8x8xf32>
    %13 = vector.shape_cast %12 : vector<1x1x4x8x8xf32> to vector<4x8x8xf32>
    %14 = vector.shape_cast %11 : vector<4x8x8xf32> to vector<1x1x4x8x8xf32>
    tpu.vector_store %arg3[%c1_19, %c0_20, %c0_21, %c0_22, %c0_23], %14 {strides = array<i32>} : memref<2x2x4x8x8xf32, #tpu.memory_space<vmem>>, vector<1x1x4x8x8xf32>,
    %c0_24 = arith.constant 0 : index
    %c0_25 = arith.constant 0 : index
    %c8_26 = arith.constant 8 : index
    %c8_27 = arith.constant 8 : index
    %15 = vector.load %arg2[%c0_24, %c0_25, %c8_26, %c8_27] : memref<1x4x16x16xf32, #tpu.memory_space<vmem>>, vector<1x4x8x8xf32>
    %16 = vector.shape_cast %15 : vector<1x4x8x8xf32> to vector<4x8x8xf32>
    %c1_28 = arith.constant 1 : index
    %c1_29 = arith.constant 1 : index
    %c0_30 = arith.constant 0 : index
    %c0_31 = arith.constant 0 : index
    %c0_32 = arith.constant 0 : index
    %17 = vector.load %arg3[%c1_28, %c1_29, %c0_30, %c0_31, %c0_32] : memref<2x2x4x8x8xf32, #tpu.memory_space<vmem>>, vector<1x1x4x8x8xf32>
    %18 = vector.shape_cast %17 : vector<1x1x4x8x8xf32> to vector<4x8x8xf32>
    %19 = vector.shape_cast %16 : vector<4x8x8xf32> to vector<1x1x4x8x8xf32>
    tpu.vector_store %arg3[%c1_28, %c1_29, %c0_30, %c0_31, %c0_32], %19 {strides = array<i32>} : memref<2x2x4x8x8xf32, #tpu.memory_space<vmem>>, vector<1x1x4x8x8xf32>,
    return
  }
  func.func @transform_0(%arg0: i32, %arg1: i32) -> (i32, i32, i32, i32) {
    %c0_i32 = arith.constant 0 : i32
    %c0_i32_0 = arith.constant 0 : i32
    %c0_i32_1 = arith.constant 0 : i32
    return %arg0, %c0_i32, %arg1, %c0_i32_0 : i32, i32, i32, i32
  }
  func.func @transform_1(%arg0: i32, %arg1: i32) -> (i32, i32, i32, i32, i32) {
    %c1_i32 = arith.constant 1 : i32
    %0 = arith.muli %arg0, %c1_i32 : i32
    %1 = arith.addi %0, %arg1 : i32
    %c0_i32 = arith.constant 0 : i32
    %c0_i32_0 = arith.constant 0 : i32
    %c0_i32_1 = arith.constant 0 : i32
    %c0_i32_2 = arith.constant 0 : i32
    %c0_i32_3 = arith.constant 0 : i32
    return %1, %c0_i32, %c0_i32_0, %c0_i32_1, %c0_i32_2 : i32, i32, i32, i32, i32
  }
}

</mosaic_0001>

<bundles_post_ra>
// kernel: tpu_custom_call.1
= control target key start
LH: loop header
LB: loop body
LE: loop exit
PB: predicated region body
PF: predicated region fallthrough
CT: control target
= control target key end

     0   :  { %6 = vsyncpa [#allocation3], 0  ;;  %s712_s0 = inlined_call_operand.hbm [shape: f32[2,4,16,16], index: 0, kind: input, shape index: {}]   ;;  %s713_s1 = inlined_call_operand.hbm [shape: f32[4,2,4,8,8], index: 1, kind: output, shape index: {}]  }
   0x1   :  { %8 = vsyncpa [#allocation3 + $0x1], 0 }
   0x2   :  { %9 = vsyncpa [#allocation4], 0 }
   0x3   :  { %11 = vsyncpa [#allocation4 + $0x1], 0  ;;  %s556_s6 = smov 0   ;;  %s558_s7 = smov 0  }
   0x4   :  { %s560_s8 = smov 0   ;;  %s562_s9 = smov 0  }
   0x5   :  { %s564_s10 = smov 0   ;;  %s566_s11 = smov 0  }
   0x6 LB: > { %s329_s12 = sadd.s32 4294967295, %s539_s11   ;;  %s330_s13 = sadd.s32 4294967294, %s539_s11   ;;  %s539_s11 = sphi %s566_s11, %s17_s11   ;;  %s535_s10 = sphi %s564_s10, %s722_s10   ;;  %s531_s9 = sphi %s562_s9, %s721_s9   ;;  %s527_s8 = sphi %s560_s8, %s720_s8   ;;  %s523_s7 = sphi %s558_s7, %s719_s7   ;;  %s519_s6 = sphi %s556_s6, %s718_s6  }
   0x7   : > { %s29_s14 = sadd.s32 1, %s535_s10  ;;  %s38_s15 = sadd.s32 1, %s527_s8 }
   0x8   : > { %p31_p0 = scmp.ge.s32.totalorder %s29_s14, 2  ;;  %p45_p1 = scmp.ne.s32.totalorder %s527_s8, %s523_s7 }
   0x9   : > { %p46_p2 = scmp.eq.s32.totalorder %s539_s11, 0  ;;  %p51_p3 = scmp.ne.s32.totalorder %s523_s7, %s519_s6 }
   0xa   : > { %s724_s14 = smov (%p31_p0, %s29_s14), 0  ;;  %p52_p5 = scmp.eq.s32.totalorder %s329_s12, 0 }
   0xb   : > { %p597_p4 = por %p46_p2, %p45_p1  ;;  %s33_s17 = ssub.s32 %s535_s10, %s724_s14 }
   0xc   : > { %p77_p6 = scmp.eq.s32.totalorder %s329_s12, 1  ;;  %p36_p7 = scmp.eq.s32.totalorder %s33_s17, 0 }
   0xd   : > { %p603_p8 = por %p52_p5, %p51_p3  ;;  %p83_p10 = scmp.eq.s32.totalorder %s330_s13, 1 }
   0xe   : > { %p607_p9 = por %p77_p6, %p45_p1  ;;  %p332_p12 = scmp.ge.s32.totalorder %s539_s11, 2 }
   0xf   : > { %s612_s20 = scalar_select %p36_p7, %s527_s8, %s38_s15  }
  0x10   : > { %p614_p11 = por %p83_p10, %p51_p3  ;;  %p372_p13 = scmp.lt.s32.totalorder %s539_s11, 2 }
  0x11   : > { %s103_s22 = sand.u32 1, %s527_s8   ;;  %s357_s24 = sshll.u32 %s535_s10, 6 }
  0x12   : > { %s333_s23 = sshll.u32 %s103_s22, 6  ;;  %s114_s27 = scalar_lea.hbm %s712_s0, %s357_s24 }
  0x13   : > { %s107_s28 = scalar_lea.vmem [#allocation2], %s333_s23  ;;  %s115_s30 = sshll.u32 %s114_s27, 4  ;;  %s116_s30 = int_to_ptr.hbm [resolvable:$true] %s115_s30 }
  0x14   : > { %s117_s29 = sshll.u32 %s107_s28, 4  ;;  %p365_p0 = pnand %p372_p13, %p597_p4  ;;  %s118_s29 = int_to_ptr.vmem [resolvable:$true] %s117_s29 }
  0x15   : > { %p336_p1 = scmp.ge.s32.totalorder %s539_s11, 1  ;;  %s104_s2 = scalar_lea.sflag [#allocation3], %s103_s22 }
  0x16   : > { %s541_s3 = smov 128   ;;  %s542_s4 = smov 8  }
  0x17   : > { %367 = dma.hbm_to_vmem [thread:$0]  (!%p365_p0), %s116_s30, 1024, %s118_s29, %s104_s2, %s541_s3, %s541_s3, %s542_s4  }
  0x18   : > { %p125_p2 = scmp.lt.s32.totalorder %s539_s11, 3 }
  0x1a   : > { %p126_p3 = pnand %p336_p1, %p125_p2 }
  0x1b   : > { %s630_s5 = sand.u32 (!%p126_p3), 1, %s523_s7  }
  0x1c   : > { %129 = sbr.rel (%p126_p3) target bundleno = 171 (0xab), region = 24  ;;  %s337_s12 = sshll.u32 (!%p126_p3), %s630_s5, 6 }
  0x1d   : > { %s132_s13 = scalar_lea.sflag (!%p126_p3), [#allocation3], %s630_s5  ;;  %s135_s15 = scalar_lea.vmem (!%p126_p3), [#allocation2], %s337_s12 }
  0x21   : > { %510 = dma.done.wait (%p603_p8), %s132_s13, 1024  }
  0x22   : > { %512 = vsyncadd (%p603_p8), %s132_s13, 4294966272  ;;  %s338_s16 = sshll.u32 %s630_s5, 7  ;;  %v169_v0 = vld [vmem:[%s135_s15 + $0x20] sm:$0xff]  ;;  %s543_s17 = smov 120   ;;  %vm162_vm0 = vcmask 64512   ;;  %v168_v2 = vld [vmem:[%s135_s15 + $0x10] sm:$0xff] }
  0x23   : > { %v167_v1 = vld [vmem:[%s135_s15] sm:$0xff]  ;;  %179 = vrot.lane.b32.xlu1 %v169_v0, %s543_s17  ;;  %v201_v3 = vld [vmem:[%s135_s15 + $0x8] sm:$0xff]  ;;  %s639_s22 = scalar_lea.vmem [#allocation5], %s338_s16  ;;  %v170_v4 = vld [vmem:[%s135_s15 + $0x30] sm:$0xff]  ;;  %s359_s18 = sshll.u32 %s531_s9, 7 }
  0x24   : > { %175 = vrot.lane.b32.xlu0 %v167_v1, %s543_s17  ;;  %163 = vst.msk [vmem:[%s639_s22] sm:$0xff] %vm162_vm0, %v167_v1  ;;  %209 = vrot.lane.b32.xlu2 %v201_v3, %s543_s17  ;;  %v202_v5 = vld [vmem:[%s135_s15 + $0x18] sm:$0xff]  ;;  %s240_s25 = scalar_lea.hbm %s713_s1, %s359_s18  ;;  %s241_s26 = sshll.u32 %s639_s22, 4  ;;  %s242_s26 = int_to_ptr.vmem [resolvable:$true] %s241_s26 }
  0x25   : > { %164 = vst.msk [vmem:[%s639_s22 + $0x8] sm:$0xff] %vm162_vm0, %v168_v2  ;;  %v203_v6 = vld [vmem:[%s135_s15 + $0x28] sm:$0xff]  ;;  %v204_v7 = vld [vmem:[%s135_s15 + $0x38] sm:$0xff]  ;;  %s243_s27 = sshll.u32 %s240_s25, 4  ;;  %s227_s9 = scalar_lea.sflag [#allocation4], %s630_s5  ;;  %s244_s27 = int_to_ptr.hbm [resolvable:$true] %s243_s27 }
  0x26   : > { %165 = vst.msk [vmem:[%s639_s22 + $0x10] sm:$0xff] %vm162_vm0, %v169_v0  ;;  %s471_s28 = sshra.s32 %s244_s27, 4  ;;  %s477_s3 = scalar_lea.hbm %s713_s1, 256  ;;  %s472_s28 = int_to_ptr.hbm [resolvable:$true] %s471_s28 }
  0x27   : > { %166 = vst.msk [vmem:[%s639_s22 + $0x18] sm:$0xff] %vm162_vm0, %v170_v4  ;;  %s473_s29 = scalar_lea.hbm %s472_s28, 128  ;;  %p478_p7 = scmp.lt.s32.totalorder %s472_s28, %s713_s1 }
  0x28   : > { %343 = vst.msk [vmem:[%s639_s22 + $0x40] sm:$0xff] %vm162_vm0, %v201_v3  ;;  %p474_p4 = scmp.ne.s32.totalorder %s472_s28, %s473_s29  ;;  %p479_p8 = scmp.lt.s32.totalorder %s477_s3, %s473_s29 }
  0x29   : > { %344 = vst.msk [vmem:[%s639_s22 + $0x48] sm:$0xff] %vm162_vm0, %v202_v5 }
  0x2a   : > { %345 = vst.msk [vmem:[%s639_s22 + $0x50] sm:$0xff] %vm162_vm0, %v203_v6  ;;  %p475_p5 = pnand %p474_p4, %p607_p9  ;;  %p480_p10 = por %p479_p8, %p478_p7 }
  0x2b   : > { %181 = vrot.lane.b32.xlu1 %v170_v4, %s543_s17  ;;  %346 = vst.msk [vmem:[%s639_s22 + $0x58] sm:$0xff] %vm162_vm0, %v204_v7 }
  0x2c   : > { %177 = vrot.lane.b32.xlu0 %v168_v2, %s543_s17  ;;  %211 = vrot.lane.b32.xlu2 %v202_v5, %s543_s17  ;;  %p476_p6 = pneg %p475_p5 }
  0x2e   : > { %p481_p13 = pnand %p480_p10, %p476_p6 }
  0x33   : > { %215 = vrot.lane.b32.xlu1 %v204_v7, %s543_s17 }
  0x34   : > { %213 = vrot.lane.b32.xlu0 %v203_v6, %s543_s17 }
  0x7e   : > { %v210_v8 = vpop.permute.xlu2 %209 }
  0x7f   : > { %347 = vst.msk [vmem:[%s639_s22 + $0x60] sm:$0xff] %vm162_vm0, %v210_v8 }
  0x86   : > { %v212_v9 = vpop.permute.xlu2 %211 }
  0x87   : > { %348 = vst.msk [vmem:[%s639_s22 + $0x68] sm:$0xff] %vm162_vm0, %v212_v9 }
  0x95   : > { %v180_v10 = vpop.permute.xlu1 %179 }
  0x96   : > { %v176_v11 = vpop.permute.xlu0 %175  ;;  %341 = vst.msk [vmem:[%s639_s22 + $0x30] sm:$0xff] %vm162_vm0, %v180_v10 }
  0x97   : > { %339 = vst.msk [vmem:[%s639_s22 + $0x20] sm:$0xff] %vm162_vm0, %v176_v11 }
  0x9d   : > { %v182_v12 = vpop.permute.xlu1 %181 }
  0x9e   : > { %v178_v13 = vpop.permute.xlu0 %177  ;;  %342 = vst.msk [vmem:[%s639_s22 + $0x38] sm:$0xff] %vm162_vm0, %v182_v12 }
  0x9f   : > { %340 = vst.msk [vmem:[%s639_s22 + $0x28] sm:$0xff] %vm162_vm0, %v178_v13 }
  0xa5   : > { %v216_v14 = vpop.permute.xlu1 %215 }
  0xa6   : > { %v214_v15 = vpop.permute.xlu0 %213  ;;  %350 = vst.msk [vmem:[%s639_s22 + $0x78] sm:$0xff] %vm162_vm0, %v216_v14 }
  0xa7   : > { %349 = vst.msk [vmem:[%s639_s22 + $0x70] sm:$0xff] %vm162_vm0, %v214_v15 }
  0xa8   : > { %484 = shalt.err (!%p481_p13)
}
  0xa9   : > { %s544_s5 = smov 128   ;;  %s545_s13 = smov 8  }
  0xaa   : > { %362 = dma.vmem_to_hbm [thread:$0]  (%p607_p9), %s242_s26, 2048, %s244_s27, %s227_s9, %s544_s5, %s544_s5, %s545_s13  }
  0xab PF: > { %s258_s15 = sand.u32 1, %s519_s6   ;;  %p369_p0 = pnand %p332_p12, %p614_p11 }
  0xac   : > { %s259_s16 = scalar_lea.sflag [#allocation4], %s258_s15 }
  0xad   : > { %p370_p1 = pneg %p369_p0 }
  0xaf   : > { %514 = dma.done.wait (%p370_p1), %s259_s16, 2048  }
  0xb0   : > { %516 = vsyncadd (%p370_p1), %s259_s16, 4294965248  ;;  %s17_s11 = sadd.s32 1, %s539_s11   ;;  %s718_s6 = smov %s523_s7 }
  0xb1   : > { %p14_p2 = scmp.ge.s32.totalorder %s17_s11, 4   ;;  %s719_s7 = smov %s527_s8 }
  0xb2   : > { %s720_s8 = smov %s612_s20  ;;  %s721_s9 = smov %s535_s10 }
  0xb3   : > { %s722_s10 = smov %s724_s14  ;;  %16 = sbr.rel (!%p14_p2) target bundleno = 6 (0x6), region = 72 }
  0xb8   :  { %265 = vsyncpa [#allocation3], 1 }
  0xb9   :  { %267 = vsyncpa [#allocation3 + $0x1], 1 }
  0xba   :  { %268 = vsyncpa [#allocation4], 1 }
  0xbb   :  { %270 = vsyncpa [#allocation4 + $0x1], 1 }

</bundles_post_ra>
